<compile_context>
chip_gen: v7x
topology: tpu7x:2x2x1
jax: 0.10.0
libtpu: 0.0.40
codegen_flags: <defaults>
</compile_context>

<pallas_src>
import math

import jax
import jax.numpy as jnp
from jax import lax
from jax.experimental import pallas as pl
from jax.experimental.pallas import tpu as pltpu


def _round_up(x, m):
    return ((x + m - 1) // m) * m


def _gelu_exact(x):
    # PyTorch nn.GELU() default: exact erf-based GELU.
    return 0.5 * x * (1.0 + lax.erf(x * (1.0 / math.sqrt(2.0))))


def mlp_kernel(x_ref, w1_ref, b1_ref, w2_ref, b2_ref, o_ref, acc_ref):
    # x_ref:  (tm, Cp)   current token tile
    # w1_ref: (Cp, th)   fc1 weight chunk (transposed vs. PyTorch)
    # b1_ref: (1, th)    fc1 bias chunk
    # w2_ref: (th, Cp)   fc2 weight chunk (transposed vs. PyTorch)
    # b2_ref: (1, Cp)    fc2 bias (grid-invariant)
    # o_ref:  (tm, Cp)   output tile (written only on the last hidden chunk)
    # acc_ref:(tm, Cp)   f32 accumulator scratch
    h_idx = pl.program_id(1)

    @pl.when(h_idx == 0)
    def _():
        # Fold the fc2 bias into the accumulator init (saves a VPU pass later).
        acc_ref[...] = jnp.broadcast_to(
            b2_ref[...].astype(jnp.float32), acc_ref.shape)

    # fc1 chunk: native-dtype operands on the MXU, f32 accumulation.
    h = jnp.dot(x_ref[...], w1_ref[...], preferred_element_type=jnp.float32)
    # Bias + exact GELU epilogue in f32. drop=0.0 -> dropout is identity.
    h = _gelu_exact(h + b1_ref[...].astype(jnp.float32))

    # fc2 partial product, accumulated in f32.
    acc_ref[...] += jnp.dot(h.astype(w2_ref.dtype), w2_ref[...],
                            preferred_element_type=jnp.float32)

    @pl.when(h_idx == pl.num_programs(1) - 1)
    def _():
        o_ref[...] = acc_ref[...].astype(o_ref.dtype)


def mlp_pallas(x, w1, b1, w2, b2, *, tm=256, th=512):
    """x: (..., C_in). Returns same shape, fc2(gelu(fc1(x)))."""
    orig_shape = x.shape
    c_in = orig_shape[-1]
    hidden = w1.shape[1]

    x2d = x.reshape(-1, c_in)
    m = x2d.shape[0]

    # Pad everything so tiles are (8,128)-aligned and the output lane dim is
    # >=128-dense. Zero padding is exact: gelu(0)=0 and padded weight rows/cols
    # are zero, so padded regions contribute nothing to the real outputs.
    c_pad = _round_up(c_in, 128)
    h_pad = _round_up(hidden, 128)

    tm = min(tm, _round_up(m, 8))          # don't over-pad tiny inputs
    tm = _round_up(tm, 8)
    th = min(th, h_pad)                    # th is a multiple of 128
    h_pad = _round_up(h_pad, th)
    m_pad = _round_up(m, tm)

    x_p = jnp.pad(x2d, ((0, m_pad - m), (0, c_pad - c_in)))
    w1_p = jnp.pad(w1, ((0, c_pad - c_in), (0, h_pad - hidden)))
    b1_p = jnp.pad(b1.reshape(1, hidden), ((0, 0), (0, h_pad - hidden)))
    w2_p = jnp.pad(w2, ((0, h_pad - hidden), (0, c_pad - c_in)))
    b2_p = jnp.pad(b2.reshape(1, c_in), ((0, 0), (0, c_pad - c_in)))

    grid = (m_pad // tm, h_pad // th)

    # Explicit VMEM budget (double-buffered tiles + f32 accumulator + headroom),
    # capped below v7x's 64 MiB physical VMEM.
    per_step = (tm * c_pad + c_pad * th + th + th * c_pad + c_pad
                + tm * c_pad) * 4
    est = 2 * per_step + tm * c_pad * 4 + (4 << 20)
    vmem_limit = int(min(max(est, 32 << 20), 64 << 20))

    out = pl.pallas_call(
        mlp_kernel,
        out_shape=jax.ShapeDtypeStruct((m_pad, c_pad), x.dtype),
        grid_spec=pltpu.PrefetchScalarGridSpec(
            num_scalar_prefetch=0,
            grid=grid,
            in_specs=[
                pl.BlockSpec((tm, c_pad), lambda i, j: (i, 0)),
                pl.BlockSpec((c_pad, th), lambda i, j: (0, j)),
                pl.BlockSpec((1, th), lambda i, j: (0, j)),
                pl.BlockSpec((th, c_pad), lambda i, j: (j, 0)),
                pl.BlockSpec((1, c_pad), lambda i, j: (0, 0)),
            ],
            out_specs=pl.BlockSpec((tm, c_pad), lambda i, j: (i, 0)),
            scratch_shapes=[pltpu.VMEM((tm, c_pad), jnp.float32)],
        ),
        compiler_params=pltpu.CompilerParams(
            dimension_semantics=("parallel", "arbitrary"),
            vmem_limit_bytes=vmem_limit),
    )(x_p, w1_p, b1_p, w2_p, b2_p)

    return out[:m, :c_in].reshape(orig_shape)


def init_mlp_params(key, in_features, hidden_features, dtype=jnp.float32):
    """Deterministic init mirroring nn.Linear default (uniform +-1/sqrt(fan_in))."""
    k1, k2, k3, k4 = jax.random.split(key, 4)
    bound1 = 1.0 / math.sqrt(in_features)
    bound2 = 1.0 / math.sqrt(hidden_features)
    # Stored as (in, out) so the kernel does x @ W.
    w1 = jax.random.uniform(k1, (in_features, hidden_features), dtype,
                            minval=-bound1, maxval=bound1)
    b1 = jax.random.uniform(k2, (hidden_features,), dtype,
                            minval=-bound1, maxval=bound1)
    w2 = jax.random.uniform(k3, (hidden_features, in_features), dtype,
                            minval=-bound2, maxval=bound2)
    b2 = jax.random.uniform(k4, (in_features,), dtype,
                            minval=-bound2, maxval=bound2)
    return w1, b1, w2, b2


if __name__ == "__main__":
    key = jax.random.PRNGKey(0)
    k_x, k_p = jax.random.split(key)

    batch, seq, in_features, hidden_features = 2, 8, 32, 64
    x = jax.random.normal(k_x, (batch, seq, in_features), jnp.float32)
    w1, b1, w2, b2 = init_mlp_params(k_p, in_features, hidden_features)

    y = mlp_pallas(x, w1, b1, w2, b2)
    jax.block_until_ready(y)

    # Reference check in plain JAX (same semantics as the PyTorch module).
    h_ref = jax.nn.gelu(x @ w1 + b1, approximate=False)
    y_ref = h_ref @ w2 + b2
    assert y.shape == x.shape
    assert jnp.allclose(y, y_ref, atol=1e-5, rtol=1e-5), "mismatch vs reference"

    print("KERNEL_OK")
</pallas_src>

<mosaic_0001>
module attributes {stable_mosaic.version = 11 : i64} {
  func.func @mlp_kernel(%arg0: i32, %arg1: i32, %arg2: memref<16x128xf32, #tpu.memory_space<vmem>>, %arg3: memref<128x128xf32, #tpu.memory_space<vmem>>, %arg4: memref<1x128xf32, #tpu.memory_space<vmem>>, %arg5: memref<128x128xf32, #tpu.memory_space<vmem>>, %arg6: memref<1x128xf32, #tpu.memory_space<vmem>>, %arg7: memref<16x128xf32, #tpu.memory_space<vmem>>, %arg8: memref<16x128xf32, #tpu.memory_space<vmem>>) attributes {dimension_semantics = [#tpu.dimension_semantics<parallel>, #tpu.dimension_semantics<arbitrary>], iteration_bounds = array<i64: 1, 1>, scalar_prefetch = 0 : i64, scratch_operands = 1 : i64, tpu.core_type = #tpu.core_type<tc>, window_params = [{transform_indices = @transform_0, window_bounds = array<i64: 16, 128>}, {transform_indices = @transform_1, window_bounds = array<i64: 128, 128>}, {transform_indices = @transform_2, window_bounds = array<i64: 1, 128>}, {transform_indices = @transform_3, window_bounds = array<i64: 128, 128>}, {pipeline_mode = #tpu.pipeline_mode<synchronous>, transform_indices = @transform_4, window_bounds = array<i64: 1, 128>}, {transform_indices = @transform_5, window_bounds = array<i64: 16, 128>}]} {
    %c0_i32 = arith.constant 0 : i32
    %0 = arith.cmpi eq, %arg1, %c0_i32 : i32
    %1 = arith.extui %0 : i1 to i32
    %c0_i32_0 = arith.constant 0 : i32
    %2 = arith.cmpi ne, %1, %c0_i32_0 : i32
    scf.if %2 {
      %c0_18 = arith.constant 0 : index
      %c0_19 = arith.constant 0 : index
      %25 = vector.load %arg6[%c0_18, %c0_19] : memref<1x128xf32, #tpu.memory_space<vmem>>, vector<1x128xf32>
      %26 = vector.shape_cast %25 : vector<1x128xf32> to vector<1x128xf32>
      %27 = vector.broadcast %26 : vector<1x128xf32> to vector<16x128xf32>
      %c0_20 = arith.constant 0 : index
      %c0_21 = arith.constant 0 : index
      %28 = vector.load %arg8[%c0_20, %c0_21] : memref<16x128xf32, #tpu.memory_space<vmem>>, vector<16x128xf32>
      tpu.vector_store %arg8[%c0_20, %c0_21], %27 {strides = array<i32>} : memref<16x128xf32, #tpu.memory_space<vmem>>, vector<16x128xf32>,
    } else {
    }
    %c0 = arith.constant 0 : index
    %c0_1 = arith.constant 0 : index
    %3 = vector.load %arg2[%c0, %c0_1] : memref<16x128xf32, #tpu.memory_space<vmem>>, vector<16x128xf32>
    %c0_2 = arith.constant 0 : index
    %c0_3 = arith.constant 0 : index
    %4 = vector.load %arg3[%c0_2, %c0_3] : memref<128x128xf32, #tpu.memory_space<vmem>>, vector<128x128xf32>
    %cst = arith.constant dense<0.000000e+00> : vector<16x128xf32>
    %5 = tpu.matmul %3, %4, %cst {dimension_numbers = #tpu.dot_dimension_numbers<[1], [0], [0], [1], [0, 0, 1, 1], [], []>} : vector<16x128xf32>, vector<128x128xf32>, vector<16x128xf32> -> vector<16x128xf32>
    %c0_4 = arith.constant 0 : index
    %c0_5 = arith.constant 0 : index
    %6 = vector.load %arg4[%c0_4, %c0_5] : memref<1x128xf32, #tpu.memory_space<vmem>>, vector<1x128xf32>
    %7 = vector.broadcast %6 : vector<1x128xf32> to vector<16x128xf32>
    %8 = arith.addf %5, %7 : vector<16x128xf32>
    %cst_6 = arith.constant 5.000000e-01 : f32
    %9 = vector.broadcast %cst_6 : f32 to vector<16x128xf32>
    %10 = arith.mulf %9, %8 : vector<16x128xf32>
    %cst_7 = arith.constant 0.707106769 : f32
    %11 = vector.broadcast %cst_7 : f32 to vector<16x128xf32>
    %12 = arith.mulf %8, %11 : vector<16x128xf32>
    %13 = math.erf %12 : vector<16x128xf32>
    %cst_8 = arith.constant 1.000000e+00 : f32
    %14 = vector.broadcast %cst_8 : f32 to vector<16x128xf32>
    %15 = arith.addf %14, %13 : vector<16x128xf32>
    %16 = arith.mulf %10, %15 : vector<16x128xf32>
    %c0_9 = arith.constant 0 : index
    %c0_10 = arith.constant 0 : index
    %17 = vector.load %arg8[%c0_9, %c0_10] : memref<16x128xf32, #tpu.memory_space<vmem>>, vector<16x128xf32>
    %c0_11 = arith.constant 0 : index
    %c0_12 = arith.constant 0 : index
    %18 = vector.load %arg5[%c0_11, %c0_12] : memref<128x128xf32, #tpu.memory_space<vmem>>, vector<128x128xf32>
    %cst_13 = arith.constant dense<0.000000e+00> : vector<16x128xf32>
    %19 = tpu.matmul %16, %18, %cst_13 {dimension_numbers = #tpu.dot_dimension_numbers<[1], [0], [0], [1], [0, 0, 1, 1], [], []>} : vector<16x128xf32>, vector<128x128xf32>, vector<16x128xf32> -> vector<16x128xf32>
    %20 = arith.addf %17, %19 : vector<16x128xf32>
    %c0_14 = arith.constant 0 : index
    %c0_15 = arith.constant 0 : index
    %21 = vector.load %arg8[%c0_14, %c0_15] : memref<16x128xf32, #tpu.memory_space<vmem>>, vector<16x128xf32>
    tpu.vector_store %arg8[%c0_14, %c0_15], %20 {strides = array<i32>} : memref<16x128xf32, #tpu.memory_space<vmem>>, vector<16x128xf32>,
    %c0_i32_16 = arith.constant 0 : i32
    %22 = arith.cmpi eq, %arg1, %c0_i32_16 : i32
    %23 = arith.extui %22 : i1 to i32
    %c0_i32_17 = arith.constant 0 : i32
    %24 = arith.cmpi ne, %23, %c0_i32_17 : i32
    scf.if %24 {
      %c0_18 = arith.constant 0 : index
      %c0_19 = arith.constant 0 : index
      %25 = vector.load %arg8[%c0_18, %c0_19] : memref<16x128xf32, #tpu.memory_space<vmem>>, vector<16x128xf32>
      %c0_20 = arith.constant 0 : index
      %c0_21 = arith.constant 0 : index
      %26 = vector.load %arg7[%c0_20, %c0_21] : memref<16x128xf32, #tpu.memory_space<vmem>>, vector<16x128xf32>
      tpu.vector_store %arg7[%c0_20, %c0_21], %25 {strides = array<i32>} : memref<16x128xf32, #tpu.memory_space<vmem>>, vector<16x128xf32>,
    } else {
    }
    return
  }
  func.func @transform_0(%arg0: i32, %arg1: i32) -> (i32, i32) {
    %c0_i32 = arith.constant 0 : i32
    %c0_i32_0 = arith.constant 0 : i32
    return %arg0, %c0_i32 : i32, i32
  }
  func.func @transform_1(%arg0: i32, %arg1: i32) -> (i32, i32) {
    %c0_i32 = arith.constant 0 : i32
    %c0_i32_0 = arith.constant 0 : i32
    return %c0_i32, %arg1 : i32, i32
  }
  func.func @transform_2(%arg0: i32, %arg1: i32) -> (i32, i32) {
    %c0_i32 = arith.constant 0 : i32
    %c0_i32_0 = arith.constant 0 : i32
    return %c0_i32, %arg1 : i32, i32
  }
  func.func @transform_3(%arg0: i32, %arg1: i32) -> (i32, i32) {
    %c0_i32 = arith.constant 0 : i32
    %c0_i32_0 = arith.constant 0 : i32
    return %arg1, %c0_i32 : i32, i32
  }
  func.func @transform_4(%arg0: i32, %arg1: i32) -> (i32, i32) {
    %c0_i32 = arith.constant 0 : i32
    %c0_i32_0 = arith.constant 0 : i32
    %c0_i32_1 = arith.constant 0 : i32
    return %c0_i32, %c0_i32_0 : i32, i32
  }
  func.func @transform_5(%arg0: i32, %arg1: i32) -> (i32, i32) {
    %c0_i32 = arith.constant 0 : i32
    %c0_i32_0 = arith.constant 0 : i32
    return %arg0, %c0_i32 : i32, i32
  }
}

</mosaic_0001>

<bundles_post_ra>
// kernel: tpu_custom_call.1
= control target key start
LH: loop header
LB: loop body
LE: loop exit
PB: predicated region body
PF: predicated region fallthrough
CT: control target
= control target key end

     0   :  { %10 = vsyncpa [#allocation4], 0  ;;  %s692_s0 = inlined_call_operand.hbm [shape: f32[16,128], index: 0, kind: input, shape index: {}]   ;;  %s693_s1 = inlined_call_operand.hbm [shape: f32[128,128], index: 1, kind: input, shape index: {}]   ;;  %s694_s2 = inlined_call_operand.vmem [shape: f32[1,128], index: 2, kind: input, shape index: {}]   ;;  %s695_s3 = inlined_call_operand.hbm [shape: f32[128,128], index: 3, kind: input, shape index: {}]   ;;  %s696_s4 = inlined_call_operand.vmem [shape: f32[1,128], index: 4, kind: input, shape index: {}]   ;;  %s697_s5 = inlined_call_operand.hbm [shape: f32[16,128], index: 5, kind: output, shape index: {}]  }
   0x1   :  { %11 = vsyncpa [#allocation7], 0 }
   0x2   :  { %12 = vsyncpa [#allocation5], 0  ;;  %s583_s18 = smov [#allocation6]   ;;  %s584_s20 = smov [#allocation3]  }
   0x3   :  { %s30_s19 = sshll.u32 %s583_s18, 4  ;;  %s18_s21 = sshll.u32 %s584_s20, 4  ;;  %s31_s19 = int_to_ptr.vmem [resolvable:$true] %s30_s19  ;;  %s619_s21 = int_to_ptr.vmem [resolvable:$true] %s18_s21 }
   0x4   :  { %s489_s24 = scalar_lea.hbm %s693_s1, 2048 }
   0x5   :  { %p490_p0 = scmp.ne.s32.totalorder %s693_s1, %s489_s24  ;;  %p493_p1 = scmp.lt.u32.totalorder %s489_s24, %s693_s1 }
   0x7   :  { %p495_p2 = pnand %p493_p1, %p490_p0 }
   0x9   :  { %498 = shalt.err (!%p495_p2)
}
   0xa   :  { %s499_s29 = scalar_lea.vmem %s31_s19, 2048  ;;  %p504_p4 = scmp.lt.s32.totalorder %s31_s19, %s31_s19 }
   0xb   :  { %p500_p3 = scmp.ne.s32.totalorder %s31_s19, %s499_s29  ;;  %p505_p5 = scmp.lt.s32.totalorder %s499_s29, %s499_s29 }
   0xd   :  { %p506_p6 = por %p505_p5, %p504_p4 }
   0xf   :  { %p507_p7 = pnand %p506_p6, %p500_p3 }
  0x11   :  { %510 = shalt.err (!%p507_p7)
}
  0x12   :  { %s585_s30 = smov 128   ;;  %s586_s6 = smov 8  }
  0x13   :  { %36 = dma.hbm_to_vmem [thread:$0]  %s693_s1, 2048, %s31_s19, [#allocation7], %s585_s30, %s585_s30, %s586_s6  }
  0x14   :  { %s511_s11 = scalar_lea.hbm %s692_s0, 256 }
  0x15   :  { %p512_p8 = scmp.ne.s32.totalorder %s692_s0, %s511_s11  ;;  %p515_p9 = scmp.lt.u32.totalorder %s511_s11, %s692_s0 }
  0x17   :  { %p517_p10 = pnand %p515_p9, %p512_p8 }
  0x19   :  { %520 = shalt.err (!%p517_p10)
}
  0x1a   :  { %s521_s16 = scalar_lea.vmem %s619_s21, 256  ;;  %p526_p12 = scmp.lt.s32.totalorder %s619_s21, %s619_s21 }
  0x1b   :  { %p522_p11 = scmp.ne.s32.totalorder %s619_s21, %s521_s16  ;;  %p527_p13 = scmp.lt.s32.totalorder %s521_s16, %s521_s16 }
  0x1d   :  { %p528_p0 = por %p527_p13, %p526_p12 }
  0x1f   :  { %p529_p1 = pnand %p528_p0, %p522_p11 }
  0x21   :  { %532 = shalt.err (!%p529_p1)
}
  0x22   :  { %24 = dma.hbm_to_vmem [thread:$0]  %s692_s0, 256, %s619_s21, [#allocation4], %s585_s30, %s585_s30, %s586_s6  }
  0x23   :  { %s587_s18 = smov [#allocation8]   ;;  %s533_s23 = scalar_lea.hbm %s695_s3, 2048 }
  0x24   :  { %s44_s19 = sshll.u32 %s587_s18, 4  ;;  %p534_p2 = scmp.ne.s32.totalorder %s695_s3, %s533_s23  ;;  %s45_s19 = int_to_ptr.vmem [resolvable:$true] %s44_s19 }
  0x25   :  { %p537_p3 = scmp.lt.u32.totalorder %s533_s23, %s695_s3 }
  0x27   :  { %p539_p4 = pnand %p537_p3, %p534_p2 }
  0x29   :  { %542 = shalt.err (!%p539_p4)
}
  0x2a   :  { %s543_s28 = scalar_lea.vmem %s45_s19, 2048  ;;  %p548_p6 = scmp.lt.s32.totalorder %s45_s19, %s45_s19 }
  0x2b   :  { %p544_p5 = scmp.ne.s32.totalorder %s45_s19, %s543_s28  ;;  %p549_p7 = scmp.lt.s32.totalorder %s543_s28, %s543_s28 }
  0x2d   :  { %p550_p8 = por %p549_p7, %p548_p6 }
  0x2f   :  { %p551_p9 = pnand %p550_p8, %p544_p5 }
  0x31   :  { %554 = shalt.err (!%p551_p9)
}
  0x32   :  { %50 = dma.hbm_to_vmem [thread:$0]  %s695_s3, 2048, %s45_s19, [#allocation7], %s585_s30, %s585_s30, %s586_s6  }
  0x33   :  { %577 = dma.done.wait [#allocation4], 256  }
  0x34   :  { %578 = vsyncadd [#allocation4], 4294967040 }
  0x35   :  { %579 = dma.done.wait [#allocation7], 4096  }
  0x36   :  { %580 = vsyncadd [#allocation7], 4294963200  ;;  %v77_v0 = vld [vmem:[#allocation6] sm:$0xff]  ;;  %v78_v1 = vld [vmem:[#allocation6 + $0x8] sm:$0xff]  ;;  %s588_s8 = smov [#allocation9]  }
  0x37   :  { %v79_v2 = vld [vmem:[#allocation6 + $0x10] sm:$0xff]  ;;  %v415_v3 = vpack.c.bf16 %v78_v1, %v77_v0  ;;  %v80_v4 = vld [vmem:[#allocation6 + $0x18] sm:$0xff]  ;;  %v81_v6 = vld [vmem:[#allocation6 + $0x20] sm:$0xff]  ;;  %s294_s9 = sshll.u32 %s588_s8, 4  ;;  %s295_s9 = int_to_ptr.vmem [resolvable:$true] %s294_s9 }
  0x38   :  { %v419_v5 = vpack.c.bf16 %v80_v4, %v79_v2  ;;  %v82_v7 = vld [vmem:[#allocation6 + $0x28] sm:$0xff]  ;;  %v83_v9 = vld [vmem:[#allocation6 + $0x30] sm:$0xff]  ;;  %v84_v10 = vld [vmem:[#allocation6 + $0x38] sm:$0xff]  ;;  %s555_s10 = scalar_lea.vmem %s295_s9, 256  ;;  %p560_p11 = scmp.lt.s32.totalorder %s295_s9, %s295_s9 }
  0x39   :  { %416 = vmatprep.subr.bf16.mxu0 %v415_v3  ;;  %v423_v8 = vpack.c.bf16 %v82_v7, %v81_v6  ;;  %v75_v11 = vld [vmem:[#allocation3] sm:$0xff]  ;;  %v187_v12 = vld [vmem:[#allocation8] sm:$0xff]  ;;  %v188_v13 = vld [vmem:[#allocation8 + $0x8] sm:$0xff]  ;;  %v427_v20 = vpack.c.bf16 %v84_v10, %v83_v9  ;;  %p556_p10 = scmp.ne.s32.totalorder %s295_s9, %s555_s10  ;;  %p561_p12 = scmp.lt.s32.totalorder %s555_s10, %s555_s10 }
  0x3a   :  { %418 = vmatpush3.bf16.msra.mxu0 %v415_v3  ;;  %377 = vmatprep.mubr.f32.mxu0 %v75_v11  ;;  %v189_v14 = vld [vmem:[#allocation8 + $0x10] sm:$0xff]  ;;  %v447_v15 = vpack.c.bf16 %v188_v13, %v187_v12  ;;  %v190_v16 = vld [vmem:[#allocation8 + $0x18] sm:$0xff]  ;;  %v191_v18 = vld [vmem:[#allocation8 + $0x20] sm:$0xff] }
  0x3b   :  { %420 = vmatprep.subr.bf16.mxu0 %v419_v5  ;;  %v451_v17 = vpack.c.bf16 %v190_v16, %v189_v14  ;;  %v192_v19 = vld [vmem:[#allocation8 + $0x28] sm:$0xff]  ;;  %v85_v21 = vld [vmem:[#allocation6 + $0x40] sm:$0xff]  ;;  %v87_v25 = vld [vmem:[#allocation6 + $0x50] sm:$0xff]  ;;  %p562_p13 = por %p561_p12, %p560_p11 }
  0x3c   :  { %448 = vmatprep.subr.bf16.mxu1 %v447_v15  ;;  %v86_v22 = vld [vmem:[#allocation6 + $0x48] sm:$0xff]  ;;  %v455_v23 = vpack.c.bf16 %v192_v19, %v191_v18  ;;  %v88_v26 = vld [vmem:[#allocation6 + $0x58] sm:$0xff]  ;;  %v89_v28 = vld [vmem:[#allocation6 + $0x60] sm:$0xff] }
  0x3d   :  { %450 = vmatpush3.bf16.msra.mxu1 %v447_v15  ;;  %v431_v24 = vpack.c.bf16 %v86_v22, %v85_v21  ;;  %v435_v27 = vpack.c.bf16 %v88_v26, %v87_v25  ;;  %v90_v29 = vld [vmem:[#allocation6 + $0x68] sm:$0xff]  ;;  %v91_v31 = vld [vmem:[#allocation6 + $0x70] sm:$0xff]  ;;  %v92_v32 = vld [vmem:[#allocation6 + $0x78] sm:$0xff]  ;;  %p563_p0 = pnand %p562_p13, %p556_p10 }
  0x3e   :  { %422 = vmatpush3.bf16.msra.mxu0 %v419_v5  ;;  %452 = vmatprep.subr.bf16.mxu1 %v451_v17  ;;  %v439_v30 = vpack.c.bf16 %v90_v29, %v89_v28  ;;  %v443_v33 = vpack.c.bf16 %v92_v32, %v91_v31  ;;  %v76_v34 = vld [vmem:[#allocation3 + $0x8] sm:$0xff]  ;;  %v193_v35 = vld [vmem:[#allocation8 + $0x30] sm:$0xff]  ;;  %v195_v38 = vld [vmem:[#allocation8 + $0x40] sm:$0xff] }
  0x3f   :  { %424 = vmatprep.subr.bf16.mxu0 %v423_v8  ;;  %v194_v36 = vld [vmem:[#allocation8 + $0x38] sm:$0xff]  ;;  %v196_v39 = vld [vmem:[#allocation8 + $0x48] sm:$0xff]  ;;  %v197_v41 = vld [vmem:[#allocation8 + $0x50] sm:$0xff] }
  0x40   :  { %v459_v37 = vpack.c.bf16 %v194_v36, %v193_v35  ;;  %v463_v40 = vpack.c.bf16 %v196_v39, %v195_v38  ;;  %v198_v42 = vld [vmem:[#allocation8 + $0x58] sm:$0xff]  ;;  %v199_v44 = vld [vmem:[#allocation8 + $0x60] sm:$0xff]  ;;  %v200_v45 = vld [vmem:[#allocation8 + $0x68] sm:$0xff] }
  0x41   :  { %454 = vmatpush3.bf16.msra.mxu1 %v451_v17  ;;  %v467_v43 = vpack.c.bf16 %v198_v42, %v197_v41  ;;  %v471_v46 = vpack.c.bf16 %v200_v45, %v199_v44  ;;  %v201_v47 = vld [vmem:[#allocation8 + $0x70] sm:$0xff]  ;;  %v202_v48 = vld [vmem:[#allocation8 + $0x78] sm:$0xff] }
  0x42   :  { %426 = vmatpush3.bf16.msra.mxu0 %v423_v8  ;;  %456 = vmatprep.subr.bf16.mxu1 %v455_v23  ;;  %v475_v49 = vpack.c.bf16 %v202_v48, %v201_v47  ;;  %v308_v50 = vld [vmem:[%s694_s2] ss:$0 sm:$0xff] }
  0x43   :  { %428 = vmatprep.subr.bf16.mxu0 %v427_v20  ;;  %v307_v1 = vld [vmem:[%s696_s4] ss:$0 sm:$0xff] }
  0x45   :  { %458 = vmatpush3.bf16.msra.mxu1 %v455_v23 }
  0x46   :  { %430 = vmatpush3.bf16.msra.mxu0 %v427_v20  ;;  %460 = vmatprep.subr.bf16.mxu1 %v459_v37 }
  0x47   :  { %432 = vmatprep.subr.bf16.mxu0 %v431_v24 }
  0x49   :  { %462 = vmatpush3.bf16.msra.mxu1 %v459_v37 }
  0x4a   :  { %434 = vmatpush3.bf16.msra.mxu0 %v431_v24  ;;  %464 = vmatprep.subr.bf16.mxu1 %v463_v40 }
  0x4b   :  { %436 = vmatprep.subr.bf16.mxu0 %v435_v27 }
  0x4d   :  { %466 = vmatpush3.bf16.msra.mxu1 %v463_v40 }
  0x4e   :  { %438 = vmatpush3.bf16.msra.mxu0 %v435_v27  ;;  %468 = vmatprep.subr.bf16.mxu1 %v467_v43 }
  0x4f   :  { %440 = vmatprep.subr.bf16.mxu0 %v439_v30 }
  0x51   :  { %470 = vmatpush3.bf16.msra.mxu1 %v467_v43 }
  0x52   :  { %442 = vmatpush3.bf16.msra.mxu0 %v439_v30  ;;  %472 = vmatprep.subr.bf16.mxu1 %v471_v46 }
  0x53   :  { %444 = vmatprep.subr.bf16.mxu0 %v443_v33 }
  0x55   :  { %474 = vmatpush3.bf16.msra.mxu1 %v471_v46 }
  0x56   :  { %446 = vmatpush3.bf16.msra.mxu0 %v443_v33  ;;  %476 = vmatprep.subr.bf16.mxu1 %v475_v49 }
  0x59   :  { %378 = vmatmul.mubr.f32.vlgmr.msra.gmra.mrb[0].mxu0 %v76_v34  ;;  %478 = vmatpush3.bf16.msra.mxu1 %v475_v49 }
 0x12c   :  { %v379_v51 = vpop.f32.mrb[0].mxu0 }
 0x12d   :  { %v172_v52 = vadd.f32 %v379_v51, %v308_v50  ;;  %v166_v53 = vpop.f32.mrb[1].mxu0 }
 0x12e   :  { %v167_v54 = vadd.f32 %v308_v50, %v166_v53 }
 0x12f   :  { %v178_v55 = vmul.f32 0.70710677, %v172_v52  ;;  %v176_v62 = vmul.f32 0.5, %v172_v52 }
 0x130   :  { %v177_v56 = vmul.f32 0.70710677, %v167_v54  ;;  %v175_v60 = vmul.f32 0.5, %v167_v54 }
 0x131   :  { %485 = verf.f32 %v178_v55 }
 0x132   :  { %487 = verf.f32 %v177_v56 }
 0x13b   :  { %v486_v57 = vpop.eup %485 }
 0x13c   :  { %v488_v58 = vpop.eup %487  ;;  %v182_v59 = vadd.f32 1.0, %v486_v57 }
 0x13d   :  { %v181_v61 = vadd.f32 1.0, %v488_v58 }
 0x13e   :  { %v184_v0 = vmul.f32 %v182_v59, %v176_v62 }
 0x13f   :  { %v183_v63 = vmul.f32 %v181_v61, %v175_v60 }
 0x141   :  { %412 = vmatprep.mubr.f32.mxu1 %v183_v63 }
 0x142   :  { %413 = vmatmul.mubr.f32.vlgmr.msra.gmra.mrb[0].mxu1 %v184_v0 }
 0x215   :  { %v414_v2 = vpop.f32.mrb[0].mxu1 }
 0x216   :  { %v279_v3 = vadd.f32 %v414_v2, %v307_v1  ;;  %v269_v4 = vpop.f32.mrb[1].mxu1 }
 0x217   :  { %v278_v5 = vadd.f32 %v307_v1, %v269_v4 }
 0x218   :  { %288 = vst [vmem:[#allocation9 + $0x8] sm:$0xff] %v279_v3 }
 0x219   :  { %287 = vst [vmem:[#allocation9] sm:$0xff] %v278_v5 }
 0x21a   :  { %566 = shalt.err (!%p563_p0)
}
 0x21b   :  { %s567_s4 = scalar_lea.hbm %s697_s5, 256 }
 0x21c   :  { %p568_p1 = scmp.ne.s32.totalorder %s697_s5, %s567_s4  ;;  %p571_p2 = scmp.lt.u32.totalorder %s567_s4, %s697_s5 }
 0x21e   :  { %p573_p3 = pnand %p571_p2, %p568_p1 }
 0x220   :  { %576 = shalt.err (!%p573_p3)
}
 0x221   :  { %300 = dma.vmem_to_hbm [thread:$0]  %s295_s9, 256, %s697_s5, [#allocation5], %s585_s30, %s585_s30, %s586_s6  }
 0x222   :  { %581 = dma.done.wait [#allocation5], 256  }
 0x223   :  { %582 = vsyncadd [#allocation5], 4294967040 }
 0x224   :  { %304 = vsyncpa [#allocation4], 1 }
 0x225   :  { %305 = vsyncpa [#allocation7], 1 }
 0x226   :  { %306 = vsyncpa [#allocation5], 1 }

</bundles_post_ra>
